<compile_context>
chip_gen: v6e
topology: v6e:2x2x1
jax: 0.10.0
libtpu: 0.0.40
codegen_flags: <defaults>
</compile_context>

<pallas_src>
import functools

import jax
import jax.numpy as jnp
from jax.experimental import pallas as pl
from jax.experimental.pallas import tpu as pltpu

LANE = 128      # lane width (minor dim of every tile)
TILE_R = 2048   # rows per grid step: (2048, 128) f32 block = 1 MiB


# ---------------------------------------------------------------------------
# Helpers
# ---------------------------------------------------------------------------
def _valid_mask(block_idx, blk_rows, n_valid):
    """Boolean (blk_rows, LANE) mask of elements that map to real input."""
    row = (
        jax.lax.broadcasted_iota(jnp.int32, (blk_rows, LANE), 0)
        + block_idx * blk_rows
    )
    col = jax.lax.broadcasted_iota(jnp.int32, (blk_rows, LANE), 1)
    return (row * LANE + col) < n_valid


def _acc_rows(blk_rows):
    """Accumulator row count: one vreg (8 rows) when the block folds cleanly."""
    return 8 if blk_rows % 8 == 0 else blk_rows


def _fold(x, blk_rows):
    """Fold a (blk_rows, LANE) value down to the accumulator shape."""
    if blk_rows % 8 == 0:
        # Leading-dim split is layout-preserving; axis-0 sum is vreg-to-vreg adds.
        return jnp.sum(x.reshape(blk_rows // 8, 8, LANE), axis=0)
    return x


def _rows_view(x):
    """Flatten to (rows, LANE) in native dtype with at most a tail-lane pad."""
    n = x.size
    assert n < 2**31, "int32 element indexing in-kernel requires numel < 2^31"
    flat = x.reshape(-1)
    rem = n % LANE
    if rem:
        # Rare fallback (numel not a multiple of 128): pad only to the next
        # lane boundary, native dtype, padded elements are masked in-kernel.
        flat = jnp.pad(flat, (0, LANE - rem))
    return flat.reshape(-1, LANE), n


# ---------------------------------------------------------------------------
# Kernels
# ---------------------------------------------------------------------------
def _bce_kernel(x_ref, out_ref, acc_ref, *, target, n, blk_rows, tiles, inv_n):
    """BCEWithLogitsLoss vs. a constant target (0.0 / 1.0), mean reduction."""
    i = pl.program_id(0)

    @pl.when(i == 0)
    def _():
        acc_ref[...] = jnp.zeros_like(acc_ref)

    x = x_ref[...].astype(jnp.float32)
    # Numerically stable: max(x, 0) - x*t + log(1 + exp(-|x|))
    loss = jnp.maximum(x, 0.0) - x * target + jnp.log1p(jnp.exp(-jnp.abs(x)))

    has_tail = (tiles * blk_rows * LANE) != n  # static python bool

    if has_tail:
        @pl.when(i < tiles - 1)
        def _():
            acc_ref[...] += _fold(loss, blk_rows)

        @pl.when(i == tiles - 1)
        def _():
            masked = jnp.where(_valid_mask(i, blk_rows, n), loss, 0.0)
            acc_ref[...] += _fold(masked, blk_rows)
    else:
        acc_ref[...] += _fold(loss, blk_rows)

    @pl.when(i == pl.num_programs(0) - 1)
    def _():
        out_ref[...] = jnp.sum(acc_ref[...], keepdims=True) * inv_n


def _g_loss_kernel(d_ref, g_ref, t_ref, bce_ref, l1_ref, bce_acc, l1_acc, *,
                   n_d, n_g, tiles_d, tiles_g, blk_d, blk_g, inv_n_d, inv_n_g):
    """Fused: BCE(disc_out vs ones) + L1(generated, ground_truth), both mean."""
    i = pl.program_id(0)

    @pl.when(i == 0)
    def _():
        bce_acc[...] = jnp.zeros_like(bce_acc)
        l1_acc[...] = jnp.zeros_like(l1_acc)

    d_has_tail = (tiles_d * blk_d * LANE) != n_d  # static
    g_has_tail = (tiles_g * blk_g * LANE) != n_g  # static

    def bce_add(mask_tail):
        x = d_ref[...].astype(jnp.float32)
        # target == 1:  max(x,0) - x + log1p(exp(-|x|))
        loss = jnp.maximum(x, 0.0) - x + jnp.log1p(jnp.exp(-jnp.abs(x)))
        if mask_tail:
            loss = jnp.where(_valid_mask(i, blk_d, n_d), loss, 0.0)
        bce_acc[...] += _fold(loss, blk_d)

    def l1_add(mask_tail):
        a = g_ref[...].astype(jnp.float32)
        b = t_ref[...].astype(jnp.float32)
        diff = jnp.abs(a - b)
        if mask_tail:
            diff = jnp.where(_valid_mask(i, blk_g, n_g), diff, 0.0)
        l1_acc[...] += _fold(diff, blk_g)

    if d_has_tail:
        @pl.when(i < tiles_d - 1)
        def _():
            bce_add(False)

        @pl.when(i == tiles_d - 1)
        def _():
            bce_add(True)
    else:
        @pl.when(i < tiles_d)
        def _():
            bce_add(False)

    if g_has_tail:
        @pl.when(i < tiles_g - 1)
        def _():
            l1_add(False)

        @pl.when(i == tiles_g - 1)
        def _():
            l1_add(True)
    else:
        @pl.when(i < tiles_g)
        def _():
            l1_add(False)

    @pl.when(i == pl.num_programs(0) - 1)
    def _():
        bce_ref[...] = jnp.sum(bce_acc[...], keepdims=True) * inv_n_d
        l1_ref[...] = jnp.sum(l1_acc[...], keepdims=True) * inv_n_g


# ---------------------------------------------------------------------------
# pallas_call wrappers
# ---------------------------------------------------------------------------
def bce_with_logits_mean(logits, target_value):
    x2d, n = _rows_view(logits)
    rows = x2d.shape[0]
    blk = min(TILE_R, rows)          # <TILE_R rows -> block == full dim (legal)
    tiles = pl.cdiv(rows, blk)

    out = pl.pallas_call(
        functools.partial(
            _bce_kernel,
            target=float(target_value),
            n=n,
            blk_rows=blk,
            tiles=tiles,
            inv_n=1.0 / n,
        ),
        out_shape=jax.ShapeDtypeStruct((1, 1), jnp.float32),
        grid_spec=pltpu.PrefetchScalarGridSpec(
            num_scalar_prefetch=0,
            grid=(tiles,),
            in_specs=[pl.BlockSpec((blk, LANE), lambda i: (i, 0))],
            out_specs=pl.BlockSpec((1, 1), lambda i: (0, 0)),
            scratch_shapes=[pltpu.VMEM((_acc_rows(blk), LANE), jnp.float32)],
        ),
        compiler_params=pltpu.CompilerParams(dimension_semantics=("arbitrary",)),
    )(x2d)
    return out[0, 0]


def g_loss_fused(disc_out, generated, ground_truth):
    d2d, n_d = _rows_view(disc_out)
    g2d, n_g = _rows_view(generated)
    t2d, n_t = _rows_view(ground_truth)
    assert n_g == n_t, "generated_img and ground_truth must have equal numel"

    rows_d, rows_g = d2d.shape[0], g2d.shape[0]
    blk_d = min(TILE_R, rows_d)
    blk_g = min(TILE_R, rows_g)
    tiles_d = pl.cdiv(rows_d, blk_d)
    tiles_g = pl.cdiv(rows_g, blk_g)
    grid = (max(tiles_d, tiles_g),)

    bce, l1 = pl.pallas_call(
        functools.partial(
            _g_loss_kernel,
            n_d=n_d, n_g=n_g,
            tiles_d=tiles_d, tiles_g=tiles_g,
            blk_d=blk_d, blk_g=blk_g,
            inv_n_d=1.0 / n_d, inv_n_g=1.0 / n_g,
        ),
        out_shape=(
            jax.ShapeDtypeStruct((1, 1), jnp.float32),
            jax.ShapeDtypeStruct((1, 1), jnp.float32),
        ),
        grid_spec=pltpu.PrefetchScalarGridSpec(
            num_scalar_prefetch=0,
            grid=grid,
            in_specs=[
                # Clamp the block index once a tensor's tiles are exhausted:
                # the repeated index elides the DMA and pl.when skips the work.
                pl.BlockSpec((blk_d, LANE),
                             lambda i: (jnp.minimum(i, tiles_d - 1), 0)),
                pl.BlockSpec((blk_g, LANE),
                             lambda i: (jnp.minimum(i, tiles_g - 1), 0)),
                pl.BlockSpec((blk_g, LANE),
                             lambda i: (jnp.minimum(i, tiles_g - 1), 0)),
            ],
            out_specs=[
                pl.BlockSpec((1, 1), lambda i: (0, 0)),
                pl.BlockSpec((1, 1), lambda i: (0, 0)),
            ],
            scratch_shapes=[
                pltpu.VMEM((_acc_rows(blk_d), LANE), jnp.float32),
                pltpu.VMEM((_acc_rows(blk_g), LANE), jnp.float32),
            ],
        ),
        compiler_params=pltpu.CompilerParams(dimension_semantics=("arbitrary",)),
    )(d2d, g2d, t2d)
    return bce[0, 0], l1[0, 0]


# ---------------------------------------------------------------------------
# Module-equivalent wrapper (no learnable parameters in the original module)
# ---------------------------------------------------------------------------
class PallasLoss:
    def G_loss(self, discriminator_out, generated_img, ground_truth):
        return g_loss_fused(discriminator_out, generated_img, ground_truth)

    def D_loss(self, discriminator_out, mark):
        return bce_with_logits_mean(discriminator_out, 1.0 if mark else 0.0)

    def forward(self):
        # Matches the PyTorch module: forward() is not implemented.
        raise NotImplementedError()


# ---------------------------------------------------------------------------
# Pure-JAX references for correctness checking
# ---------------------------------------------------------------------------
def _ref_bce(logits, t):
    x = logits.astype(jnp.float32)
    return jnp.mean(jnp.maximum(x, 0.0) - x * t + jnp.log1p(jnp.exp(-jnp.abs(x))))


def _ref_l1(a, b):
    return jnp.mean(jnp.abs(a.astype(jnp.float32) - b.astype(jnp.float32)))


def _check(got, ref, rtol=1e-4, atol=1e-5):
    assert jnp.allclose(got, ref, atol=atol, rtol=rtol), (got, ref)


if __name__ == "__main__":
    key = jax.random.PRNGKey(0)
    keys = jax.random.split(key, 8)

    loss = PallasLoss()

    # 1) Small GAN-style shapes (NCHW): patch-discriminator logits + RGB images.
    disc_out = jax.random.normal(keys[0], (2, 1, 16, 16), dtype=jnp.float32)
    generated = jax.random.normal(keys[1], (2, 3, 16, 16), dtype=jnp.float32)
    ground_truth = jax.random.normal(keys[2], (2, 3, 16, 16), dtype=jnp.float32)

    g_ce, g_l1 = loss.G_loss(disc_out, generated, ground_truth)
    d_real = loss.D_loss(disc_out, True)
    d_fake = loss.D_loss(disc_out, False)
    results = jax.block_until_ready((g_ce, g_l1, d_real, d_fake))

    refs = (
        _ref_bce(disc_out, 1.0),
        _ref_l1(generated, ground_truth),
        _ref_bce(disc_out, 1.0),
        _ref_bce(disc_out, 0.0),
    )
    for got, ref in zip(results, refs):
        _check(got, ref)

    # 2) numel not divisible by 128 (30x30 patch logits) + single-tile images
    #    that exercise the folded (8,128) accumulator path.
    disc2 = jax.random.normal(keys[3], (2, 1, 30, 30), dtype=jnp.float32)
    gen2 = jax.random.normal(keys[4], (2, 3, 160, 160), dtype=jnp.float32)
    gt2 = jax.random.normal(keys[5], (2, 3, 160, 160), dtype=jnp.float32)

    g_ce2, g_l12 = loss.G_loss(disc2, gen2, gt2)
    d_fake2 = loss.D_loss(disc2, False)
    got2 = jax.block_until_ready((g_ce2, g_l12, d_fake2))
    refs2 = (_ref_bce(disc2, 1.0), _ref_l1(gen2, gt2), _ref_bce(disc2, 0.0))
    for got, ref in zip(got2, refs2):
        _check(got, ref)

    # 3) Multi-tile images (rows > TILE_R) with a ragged last row-block:
    #    exercises tail-only masking, clamped block indices for the small
    #    disc tensor, and the multi-tile folded-accumulator BCE path.
    gen3 = jax.random.normal(keys[6], (2, 3, 256, 256), dtype=jnp.float32)
    gt3 = jax.random.normal(keys[7], (2, 3, 256, 256), dtype=jnp.float32)

    g_ce3, g_l13 = loss.G_loss(disc2, gen3, gt3)
    d_big = bce_with_logits_mean(gen3, 0.0)  # multi-tile standalone BCE
    got3 = jax.block_until_ready((g_ce3, g_l13, d_big))
    refs3 = (_ref_bce(disc2, 1.0), _ref_l1(gen3, gt3), _ref_bce(gen3, 0.0))
    for got, ref in zip(got3, refs3):
        _check(got, ref, rtol=3e-4)

    print("KERNEL_OK")
</pallas_src>

<mosaic_0001>
module attributes {stable_mosaic.version = 11 : i64} {
  func.func @_g_loss_kernel(%arg0: i32, %arg1: memref<4x128xf32, #tpu.memory_space<vmem>>, %arg2: memref<12x128xf32, #tpu.memory_space<vmem>>, %arg3: memref<12x128xf32, #tpu.memory_space<vmem>>, %arg4: memref<1x1xf32, #tpu.memory_space<vmem>>, %arg5: memref<1x1xf32, #tpu.memory_space<vmem>>, %arg6: memref<4x128xf32, #tpu.memory_space<vmem>>, %arg7: memref<12x128xf32, #tpu.memory_space<vmem>>) attributes {dimension_semantics = [#tpu.dimension_semantics<arbitrary>], iteration_bounds = array<i64: 1>, scalar_prefetch = 0 : i64, scratch_operands = 2 : i64, tpu.core_type = #tpu.core_type<tc>, window_params = [{transform_indices = @transform_0, window_bounds = array<i64: 4, 128>}, {transform_indices = @transform_1, window_bounds = array<i64: 12, 128>}, {transform_indices = @transform_2, window_bounds = array<i64: 12, 128>}, {pipeline_mode = #tpu.pipeline_mode<synchronous>, transform_indices = @transform_3, window_bounds = array<i64: 1, 1>}, {pipeline_mode = #tpu.pipeline_mode<synchronous>, transform_indices = @transform_4, window_bounds = array<i64: 1, 1>}]} {
    %c0_i32 = arith.constant 0 : i32
    %0 = arith.cmpi eq, %arg0, %c0_i32 : i32
    %1 = arith.extui %0 : i1 to i32
    %c0_i32_0 = arith.constant 0 : i32
    %2 = arith.cmpi ne, %1, %c0_i32_0 : i32
    scf.if %2 {
      %cst = arith.constant 0.000000e+00 : f32
      %12 = vector.broadcast %cst : f32 to vector<4x128xf32>
      %c0 = arith.constant 0 : index
      %c0_6 = arith.constant 0 : index
      %13 = vector.load %arg6[%c0, %c0_6] : memref<4x128xf32, #tpu.memory_space<vmem>>, vector<4x128xf32>
      tpu.vector_store %arg6[%c0, %c0_6], %12 {strides = array<i32>} : memref<4x128xf32, #tpu.memory_space<vmem>>, vector<4x128xf32>,
      %cst_7 = arith.constant 0.000000e+00 : f32
      %14 = vector.broadcast %cst_7 : f32 to vector<12x128xf32>
      %c0_8 = arith.constant 0 : index
      %c0_9 = arith.constant 0 : index
      %15 = vector.load %arg7[%c0_8, %c0_9] : memref<12x128xf32, #tpu.memory_space<vmem>>, vector<12x128xf32>
      tpu.vector_store %arg7[%c0_8, %c0_9], %14 {strides = array<i32>} : memref<12x128xf32, #tpu.memory_space<vmem>>, vector<12x128xf32>,
    } else {
    }
    %c1_i32 = arith.constant 1 : i32
    %3 = arith.cmpi slt, %arg0, %c1_i32 : i32
    %4 = arith.extui %3 : i1 to i32
    %c0_i32_1 = arith.constant 0 : i32
    %5 = arith.cmpi ne, %4, %c0_i32_1 : i32
    scf.if %5 {
      %c0 = arith.constant 0 : index
      %c0_6 = arith.constant 0 : index
      %12 = vector.load %arg1[%c0, %c0_6] : memref<4x128xf32, #tpu.memory_space<vmem>>, vector<4x128xf32>
      %cst = arith.constant 0.000000e+00 : f32
      %13 = vector.broadcast %cst : f32 to vector<4x128xf32>
      %14 = arith.maximumf %12, %13 : vector<4x128xf32>
      %15 = arith.subf %14, %12 : vector<4x128xf32>
      %16 = math.absf %12 : vector<4x128xf32>
      %cst_7 = arith.constant 0.000000e+00 : f32
      %17 = vector.broadcast %cst_7 : f32 to vector<4x128xf32>
      %18 = arith.subf %17, %16 : vector<4x128xf32>
      %19 = math.exp %18 : vector<4x128xf32>
      %20 = math.log1p %19 : vector<4x128xf32>
      %21 = arith.addf %15, %20 : vector<4x128xf32>
      %c0_8 = arith.constant 0 : index
      %c0_9 = arith.constant 0 : index
      %22 = vector.load %arg6[%c0_8, %c0_9] : memref<4x128xf32, #tpu.memory_space<vmem>>, vector<4x128xf32>
      %23 = arith.addf %22, %21 : vector<4x128xf32>
      %c0_10 = arith.constant 0 : index
      %c0_11 = arith.constant 0 : index
      %24 = vector.load %arg6[%c0_10, %c0_11] : memref<4x128xf32, #tpu.memory_space<vmem>>, vector<4x128xf32>
      tpu.vector_store %arg6[%c0_10, %c0_11], %23 {strides = array<i32>} : memref<4x128xf32, #tpu.memory_space<vmem>>, vector<4x128xf32>,
    } else {
    }
    %c1_i32_2 = arith.constant 1 : i32
    %6 = arith.cmpi slt, %arg0, %c1_i32_2 : i32
    %7 = arith.extui %6 : i1 to i32
    %c0_i32_3 = arith.constant 0 : i32
    %8 = arith.cmpi ne, %7, %c0_i32_3 : i32
    scf.if %8 {
      %c0 = arith.constant 0 : index
      %c0_6 = arith.constant 0 : index
      %12 = vector.load %arg2[%c0, %c0_6] : memref<12x128xf32, #tpu.memory_space<vmem>>, vector<12x128xf32>
      %c0_7 = arith.constant 0 : index
      %c0_8 = arith.constant 0 : index
      %13 = vector.load %arg3[%c0_7, %c0_8] : memref<12x128xf32, #tpu.memory_space<vmem>>, vector<12x128xf32>
      %14 = arith.subf %12, %13 : vector<12x128xf32>
      %15 = math.absf %14 : vector<12x128xf32>
      %c0_9 = arith.constant 0 : index
      %c0_10 = arith.constant 0 : index
      %16 = vector.load %arg7[%c0_9, %c0_10] : memref<12x128xf32, #tpu.memory_space<vmem>>, vector<12x128xf32>
      %17 = arith.addf %16, %15 : vector<12x128xf32>
      %c0_11 = arith.constant 0 : index
      %c0_12 = arith.constant 0 : index
      %18 = vector.load %arg7[%c0_11, %c0_12] : memref<12x128xf32, #tpu.memory_space<vmem>>, vector<12x128xf32>
      tpu.vector_store %arg7[%c0_11, %c0_12], %17 {strides = array<i32>} : memref<12x128xf32, #tpu.memory_space<vmem>>, vector<12x128xf32>,
    } else {
    }
    %c0_i32_4 = arith.constant 0 : i32
    %9 = arith.cmpi eq, %arg0, %c0_i32_4 : i32
    %10 = arith.extui %9 : i1 to i32
    %c0_i32_5 = arith.constant 0 : i32
    %11 = arith.cmpi ne, %10, %c0_i32_5 : i32
    scf.if %11 {
      %c0 = arith.constant 0 : index
      %c0_6 = arith.constant 0 : index
      %12 = vector.load %arg6[%c0, %c0_6] : memref<4x128xf32, #tpu.memory_space<vmem>>, vector<4x128xf32>
      %13 = vector.shape_cast %12 : vector<4x128xf32> to vector<1x4x128xf32>
      %cst = arith.constant dense<0.000000e+00> : vector<1xf32>
      %14 = vector.multi_reduction <add>, %13, %cst [1, 2] : vector<1x4x128xf32> to vector<1xf32>
      %15 = vector.shape_cast %14 : vector<1xf32> to vector<1x1x1xf32>
      %16 = vector.extract %15[0, 0, 0] : f32 from vector<1x1x1xf32>
      %17 = vector.broadcast %16 : f32 to vector<1x1xf32>
      %cst_7 = arith.constant 0.001953125 : f32
      %18 = vector.broadcast %cst_7 : f32 to vector<1x1xf32>
      %19 = arith.mulf %17, %18 : vector<1x1xf32>
      %c0_8 = arith.constant 0 : index
      %c0_9 = arith.constant 0 : index
      %20 = vector.load %arg4[%c0_8, %c0_9] : memref<1x1xf32, #tpu.memory_space<vmem>>, vector<1x1xf32>
      tpu.vector_store %arg4[%c0_8, %c0_9], %19 {strides = array<i32>} : memref<1x1xf32, #tpu.memory_space<vmem>>, vector<1x1xf32>,
      %c0_10 = arith.constant 0 : index
      %c0_11 = arith.constant 0 : index
      %21 = vector.load %arg7[%c0_10, %c0_11] : memref<12x128xf32, #tpu.memory_space<vmem>>, vector<12x128xf32>
      %22 = vector.shape_cast %21 : vector<12x128xf32> to vector<1x12x128xf32>
      %cst_12 = arith.constant dense<0.000000e+00> : vector<1xf32>
      %23 = vector.multi_reduction <add>, %22, %cst_12 [1, 2] : vector<1x12x128xf32> to vector<1xf32>
      %24 = vector.shape_cast %23 : vector<1xf32> to vector<1x1x1xf32>
      %25 = vector.extract %24[0, 0, 0] : f32 from vector<1x1x1xf32>
      %26 = vector.broadcast %25 : f32 to vector<1x1xf32>
      %cst_13 = arith.constant 6.51041686E-4 : f32
      %27 = vector.broadcast %cst_13 : f32 to vector<1x1xf32>
      %28 = arith.mulf %26, %27 : vector<1x1xf32>
      %c0_14 = arith.constant 0 : index
      %c0_15 = arith.constant 0 : index
      %29 = vector.load %arg5[%c0_14, %c0_15] : memref<1x1xf32, #tpu.memory_space<vmem>>, vector<1x1xf32>
      tpu.vector_store %arg5[%c0_14, %c0_15], %28 {strides = array<i32>} : memref<1x1xf32, #tpu.memory_space<vmem>>, vector<1x1xf32>,
    } else {
    }
    return
  }
  func.func @transform_0(%arg0: i32) -> (i32, i32) {
    %c0_i32 = arith.constant 0 : i32
    %0 = arith.minsi %arg0, %c0_i32 : i32
    %c0_i32_0 = arith.constant 0 : i32
    %c0_i32_1 = arith.constant 0 : i32
    return %0, %c0_i32_0 : i32, i32
  }
  func.func @transform_1(%arg0: i32) -> (i32, i32) {
    %c0_i32 = arith.constant 0 : i32
    %0 = arith.minsi %arg0, %c0_i32 : i32
    %c0_i32_0 = arith.constant 0 : i32
    %c0_i32_1 = arith.constant 0 : i32
    return %0, %c0_i32_0 : i32, i32
  }
  func.func @transform_2(%arg0: i32) -> (i32, i32) {
    %c0_i32 = arith.constant 0 : i32
    %0 = arith.minsi %arg0, %c0_i32 : i32
    %c0_i32_0 = arith.constant 0 : i32
    %c0_i32_1 = arith.constant 0 : i32
    return %0, %c0_i32_0 : i32, i32
  }
  func.func @transform_3(%arg0: i32) -> (i32, i32) {
    %c0_i32 = arith.constant 0 : i32
    %c0_i32_0 = arith.constant 0 : i32
    %c0_i32_1 = arith.constant 0 : i32
    return %c0_i32, %c0_i32_0 : i32, i32
  }
  func.func @transform_4(%arg0: i32) -> (i32, i32) {
    %c0_i32 = arith.constant 0 : i32
    %c0_i32_0 = arith.constant 0 : i32
    %c0_i32_1 = arith.constant 0 : i32
    return %c0_i32, %c0_i32_0 : i32, i32
  }
}

</mosaic_0001>

<bundles_post_ra>
// kernel: tpu_custom_call.1
= control target key start
LH: loop header
LB: loop body
LE: loop exit
PB: predicated region body
PF: predicated region fallthrough
CT: control target
= control target key end

     0   :  { %10 = vsyncpa [#allocation5], 0  ;;  %s341_s0 = inlined_call_operand.hbm [shape: f32[4,128], index: 0, kind: input, shape index: {}]   ;;  %s342_s1 = inlined_call_operand.hbm [shape: f32[12,128], index: 1, kind: input, shape index: {}]   ;;  %s343_s2 = inlined_call_operand.hbm [shape: f32[12,128], index: 2, kind: input, shape index: {}]   ;;  %s344_s3 = inlined_call_operand.hbm [shape: f32[1,1], index: 3, kind: output, shape index: {0}]   ;;  %s345_s4 = inlined_call_operand.hbm [shape: f32[1,1], index: 4, kind: output, shape index: {1}]  }
   0x1   :  { %11 = vsyncpa [#allocation8], 0 }
   0x2   :  { %12 = vsyncpa [#allocation6], 0 }
   0x3   :  { %13 = vsyncpa [#allocation12], 0  ;;  %s291_s15 = smov [#allocation7]  }
   0x4   :  { %s29_s16 = sshll.u32 %s291_s15, 4  ;;  %s30_s16 = int_to_ptr.vmem [resolvable:$true] %s29_s16 }
   0x5   :  { %s191_s17 = scalar_lea.vmem %s30_s16, 256  ;;  %p196_p1 = scmp.lt.s32.totalorder %s30_s16, %s30_s16 }
   0x6   :  { %p192_p0 = scmp.ne.s32.totalorder %s30_s16, %s191_s17  ;;  %p197_p2 = scmp.lt.s32.totalorder %s191_s17, %s191_s17 }
   0x8   :  { %p198_p3 = por %p197_p2, %p196_p1 }
   0xa   :  { %p199_p4 = pnand %p198_p3, %p192_p0 }
   0xc   :  { %202 = shalt.err (!%p199_p4)
}
   0xd   :  { %s292_s18 = smov 128   ;;  %s293_s19 = smov 8  }
   0xe   :  { %35 = dma.hbm_to_vmem [thread:$0]  %s342_s1, 256, %s30_s16, [#allocation8], %s292_s18, %s292_s18, %s293_s19  }
   0xf   :  { %s294_s22 = smov [#allocation4]   ;;  %s295_s24 = smov [#allocation9]  }
  0x10   :  { %s20_s23 = sshll.u32 %s294_s22, 4  ;;  %s41_s25 = sshll.u32 %s295_s24, 4  ;;  %s21_s23 = int_to_ptr.vmem [resolvable:$true] %s20_s23  ;;  %s42_s25 = int_to_ptr.vmem [resolvable:$true] %s41_s25 }
  0x11   :  { %s211_s26 = scalar_lea.vmem %s21_s23, 64  ;;  %p216_p6 = scmp.lt.s32.totalorder %s21_s23, %s21_s23 }
  0x12   :  { %p212_p5 = scmp.ne.s32.totalorder %s21_s23, %s211_s26  ;;  %p217_p7 = scmp.lt.s32.totalorder %s211_s26, %s211_s26 }
  0x14   :  { %p218_p8 = por %p217_p7, %p216_p6 }
  0x16   :  { %p219_p9 = pnand %p218_p8, %p212_p5 }
  0x18   :  { %222 = shalt.err (!%p219_p9)
}
  0x19   :  { %23 = dma.hbm_to_vmem [thread:$0]  %s341_s0, 64, %s21_s23, [#allocation5]  }
  0x1a   :  { %s231_s29 = scalar_lea.vmem %s42_s25, 256  ;;  %p236_p11 = scmp.lt.s32.totalorder %s42_s25, %s42_s25 }
  0x1b   :  { %p232_p10 = scmp.ne.s32.totalorder %s42_s25, %s231_s29  ;;  %p237_p12 = scmp.lt.s32.totalorder %s231_s29, %s231_s29 }
  0x1d   :  { %p238_p13 = por %p237_p12, %p236_p11 }
  0x1f   :  { %p239_p0 = pnand %p238_p13, %p232_p10 }
  0x21   :  { %242 = shalt.err (!%p239_p0)
}
  0x22   :  { %47 = dma.hbm_to_vmem [thread:$0]  %s343_s2, 256, %s42_s25, [#allocation8], %s292_s18, %s292_s18, %s293_s19  }
  0x23   :  { %283 = dma.done.wait [#allocation5], 64  }
  0x24   :  { %284 = vsyncadd [#allocation5], 4294967232 }
  0x25   :  { %285 = dma.done.wait [#allocation8], 512  }
  0x26   :  { %286 = vsyncadd [#allocation8], 4294966784  ;;  %v296_v0 = vmov 0.0   ;;  %v68_v1 = vld [vmem:[#allocation4] sm:$0xf]  ;;  %v88_v6 = vld [vmem:[#allocation7] sm:$0xff] }
  0x27   :  { %61 = vst [vmem:[#allocation2] sm:$0xf] %v296_v0  ;;  %63 = vst [vmem:[#allocation3 + $0x8] sm:$0xf] %v296_v0  ;;  %v89_v2 = vld [vmem:[#allocation7 + $0x8] sm:$0xf] }
  0x28   :  { %v91_v3 = vld [vmem:[#allocation9 + $0x8] sm:$0xf]  ;;  %v71_v4 = vand.u32 2147483647, %v68_v1  ;;  %v90_v8 = vld [vmem:[#allocation9] sm:$0xff]  ;;  %v69_v19 = vmax.f32 %v68_v1, 0.0 }
  0x29   :  { %v93_v5 = vsub.f32 %v89_v2, %v91_v3  ;;  %v92_v11 = vsub.f32 %v88_v6, %v90_v8  ;;  %vm106_vm1 = vcmask 1043456   ;;  %s297_s0 = smov [#allocation10]   ;;  %vm119_vm2 = vcmask 0   ;;  %s298_s6 = smov [#allocation11]  }
  0x2a   :  { %v72_v9 = vsub.f32 0.0, %v71_v4  ;;  %v70_v23 = vsub.f32 %v69_v19, %v68_v1  ;;  %s143_s2 = sshll.u32 %s297_s0, 4  ;;  %s153_s7 = sshll.u32 %s298_s6, 4  ;;  %s144_s2 = int_to_ptr.vmem [resolvable:$true] %s143_s2  ;;  %s154_s7 = int_to_ptr.vmem [resolvable:$true] %s153_s7 }
  0x2b   :  { %v95_v10 = vand.u32 2147483647, %v93_v5  ;;  %v94_v14 = vand.u32 2147483647, %v92_v11  ;;  %s243_s9 = scalar_lea.vmem %s144_s2, 16  ;;  %s247_s10 = scalar_lea.vmem %s144_s2, 32 }
  0x2c   :  { %v73_v12 = vmul.f32 1.442695, %v72_v9  ;;  %p244_p1 = scmp.ne.s32.totalorder %s144_s2, %s243_s9  ;;  %p248_p2 = scmp.lt.s32.totalorder %s144_s2, %s144_s2 }
  0x2d   :  { %p249_p3 = scmp.lt.s32.totalorder %s247_s10, %s243_s9 }
  0x2e   :  { %v97_v7 = vld [vmem:[#allocation3 + $0x8] sm:$0xf]  ;;  %179 = vpow2.f32 %v73_v12  ;;  %v85_v26 = vld [vmem:[#allocation2] sm:$0xf] }
  0x2f   :  { %v99_v13 = vadd.f32 %v97_v7, %v95_v10  ;;  %p250_p4 = por %p249_p3, %p248_p2 }
  0x31   :  { %101 = vst [vmem:[#allocation3 + $0x8] sm:$0xf] %v99_v13  ;;  %p251_p5 = pnand %p250_p4, %p244_p1 }
  0x38   :  { %v122_v29 = vld [vmem:[#allocation3 + $0x8] sm:$0xf] }
  0x39   :  { %v123_v30 = vsel %vm106_vm1, %v122_v29, 0.0 }
  0x3a   :  { %v124_v33 = vadd.f32 %v123_v30, %v94_v14 }
  0x3b   :  { %v180_v15 = vpop.eup %179 }
  0x3c   :  { %v75_v16 = vadd.f32 1.0, %v180_v15  ;;  %v78_v17 = vmul.f32 -0.5, %v180_v15  ;;  %v81_v20 = vand.u32 2147483647, %v180_v15 }
  0x3e   :  { %181 = vlog2.f32 %v75_v16  ;;  %v79_v18 = vadd.f32 1.0, %v78_v17  ;;  %vm82_vm0 = vcmp.lt.f32.partialorder %v81_v20, 0.0004427343 }
  0x40   :  { %v80_v21 = vmul.f32 %v180_v15, %v79_v18 }
  0x4b   :  { %v182_v22 = vpop.eup %181 }
  0x4c   :  { %v77_v24 = vmul.f32 0.6931472, %v182_v22 }
  0x4e   :  { %v83_v25 = vsel %vm82_vm0, %v80_v21, %v77_v24 }
  0x4f   :  { %v84_v27 = vadd.f32 %v83_v25, %v70_v23 }
  0x51   :  { %v86_v28 = vadd.f32 %v85_v26, %v84_v27 }
  0x53   :  { %87 = vst [vmem:[#allocation2] sm:$0xf] %v86_v28 }
  0x5a   :  { %v105_v31 = vld [vmem:[#allocation2] sm:$0xf] }
  0x5b   :  { %v107_v32 = vsel %vm106_vm1, %v105_v31, 0.0 }
  0x5c   :  { %108 = vadd.xlane.f32.xlu0 %v107_v32 }
  0x60   :  { %125 = vadd.xlane.f32.xlu0 %v124_v33 }
  0xe5   :  { %v109_v34 = vpop.xlane.xlu0 %108 }
  0xe6   :  { %v110_v35 = vrot.slane %v109_v34, 4 }
  0xe8   :  { %v111_v36 = vadd.f32 %v110_v35, %v109_v34 }
  0xe9   :  { %v126_v37 = vpop.xlane.xlu0 %125 }
  0xea   :  { %v112_v38 = vrot.slane %v111_v36, 2  ;;  %v127_v39 = vrot.slane %v126_v37, 4 }
  0xec   :  { %v128_v40 = vadd.f32 %v127_v39, %v126_v37  ;;  %v113_v41 = vadd.f32 %v112_v38, %v111_v36 }
  0xee   :  { %v129_v42 = vrot.slane %v128_v40, 2  ;;  %v114_v43 = vrot.slane %v113_v41, 1 }
  0xf0   :  { %v130_v44 = vadd.f32 %v129_v42, %v128_v40  ;;  %v115_v45 = vadd.f32 %v114_v43, %v113_v41 }
  0xf2   :  { %167 = vpush %v115_v45  ;;  %v131_v46 = vrot.slane %v130_v44, 1 }
  0xf4   :  { %v132_v47 = vadd.f32 %v131_v46, %v130_v44 }
  0xf6   :  { %169 = vpush %v132_v47 }
 0x123   :  { %s168_s5 = spop %167 }
 0x124   :  { %v117_v48 = vstv %s168_s5 }
 0x125   :  { %v118_v49 = vmul.f32 0.001953125, %v117_v48 }
 0x127   :  { %s170_s8 = spop %169  ;;  %120 = vst.msk [vmem:[#allocation10] sm:$0x1] %vm119_vm2, %v118_v49 }
 0x128   :  { %v134_v50 = vstv %s170_s8 }
 0x129   :  { %254 = shalt.err (!%p251_p5)
}
 0x12a   :  { %146 = dma.vmem_to_hbm [thread:$0]  %s144_s2, 16, %s344_s3, [#allocation6]   ;;  %v135_v51 = vmul.f32 0.0006510417, %v134_v50 }
 0x12b   :  { %s263_s13 = scalar_lea.vmem %s154_s7, 16  ;;  %s267_s14 = scalar_lea.vmem %s154_s7, 32 }
 0x12c   :  { %136 = vst.msk [vmem:[#allocation11] sm:$0x1] %vm119_vm2, %v135_v51  ;;  %p264_p6 = scmp.ne.s32.totalorder %s154_s7, %s263_s13  ;;  %p268_p7 = scmp.lt.s32.totalorder %s154_s7, %s154_s7 }
 0x12d   :  { %p269_p8 = scmp.lt.s32.totalorder %s267_s14, %s263_s13 }
 0x12f   :  { %p270_p9 = por %p269_p8, %p268_p7 }
 0x131   :  { %p271_p10 = pnand %p270_p9, %p264_p6 }
 0x133   :  { %274 = shalt.err (!%p271_p10)
}
 0x134   :  { %156 = dma.vmem_to_hbm [thread:$0]  %s154_s7, 16, %s345_s4, [#allocation12]  }
 0x135   :  { %287 = dma.done.wait [#allocation6], 16  }
 0x136   :  { %288 = vsyncadd [#allocation6], 4294967280 }
 0x137   :  { %289 = dma.done.wait [#allocation12], 16  }
 0x138   :  { %290 = vsyncadd [#allocation12], 4294967280 }
 0x139   :  { %163 = vsyncpa [#allocation5], 1 }
 0x13a   :  { %164 = vsyncpa [#allocation8], 1 }
 0x13b   :  { %165 = vsyncpa [#allocation6], 1 }
 0x13c   :  { %166 = vsyncpa [#allocation12], 1 }

</bundles_post_ra>
